<compile_context>
chip_gen: v6e
topology: v6e:2x2x1
jax: 0.10.0
libtpu: 0.0.40
codegen_flags: <defaults>
</compile_context>

<pallas_src>
import functools

import jax
import jax.numpy as jnp
from jax.experimental import pallas as pl
from jax.experimental.pallas import tpu as pltpu


def _round_up(c, m=8):
    return ((c + m - 1) // m) * m


def _geom(H, W):
    """Geometry of the zero-padded, lane-aligned, flattened activation layout."""
    Wp = W + 2                                # padded row width
    base = pl.cdiv(Wp + 1, 128) * 128         # 128-aligned flat index of interior (0, 0)
    off = base - (Wp + 1)                     # flat index of padded-image element (0, 0)
    L = base + (H + 2) * Wp                   # total flat length (incl. slack read by taps)
    return Wp, base, off, L


def _fused_vgg_block_kernel(*refs, num_layers, cins_p, H, W, Wp, base):
    """[conv3x3 -> (+shift) -> relu] * num_layers -> maxpool2x2, for ONE sample.

    refs = (x_flat, w2d_0, shift_0, ..., w2d_{L-1}, shift_{L-1}, sel,   # inputs
            out,                                                        # output
            act, col)                                                   # VMEM scratch
    """
    x_ref = refs[0]
    w_refs = refs[1:1 + 2 * num_layers:2]
    s_refs = refs[2:2 + 2 * num_layers:2]
    sel_ref = refs[1 + 2 * num_layers]
    o_ref = refs[2 + 2 * num_layers]
    act_ref = refs[3 + 2 * num_layers]
    col_ref = refs[4 + 2 * num_layers]

    HWp = H * Wp

    # Zero the activation scratch once per grid step: keeps the pad rows and the
    # head/tail alignment slack (read by the corner taps / pool windows) at exactly 0.
    act_ref[...] = jnp.zeros_like(act_ref)

    # Pad-column mask built in-kernel (no HBM input): lane p is interior iff (p % Wp) < W.
    lane = jax.lax.broadcasted_iota(jnp.int32, (1, HWp), 1)
    keep = (lane % Wp) < W

    for l in range(num_layers):            # layer_num is static -> fully unrolled
        cin_p = cins_p[l]
        k = 9 * cin_p
        # im2col-in-VMEM: 9 lane-shifted (cin_p, HWp) windows -> (9*cin_p, HWp) scratch.
        for t in range(9):
            ky, kx = t // 3, t % 3
            start = base + (ky - 1) * Wp + (kx - 1)
            if l == 0:
                win = x_ref[0, :, pl.ds(start, HWp)]
            else:
                win = act_ref[:, pl.ds(start, HWp)]
            col_ref[t * cin_p:(t + 1) * cin_p, :] = win
        # One (Cout_p, 9*cin_p) @ (9*cin_p, HWp) MXU matmul, bf16 operands, f32 accumulate.
        y = jnp.dot(w_refs[l][...],
                    col_ref[0:k, :].astype(jnp.bfloat16),
                    preferred_element_type=jnp.float32)
        y = y + s_refs[l][...]               # conv bias + eval-mode BN (scale folded into w)
        y = jnp.maximum(y, 0.0)              # ReLU
        y = jnp.where(keep, y, 0.0)          # zero the 2 pad columns per row
        # All reads were materialized into col_ref, so the in-place wide store is safe.
        act_ref[:, pl.ds(base, HWp)] = y

    # MaxPool 2x2 / stride 2: elementwise max of 4 shifted windows gives the full
    # 2x2-patch max at every interior lane; a single 0/1 selector matmul then picks
    # the lanes 2*yo*Wp + 2*xo -> one lane-dense (C, Ho*Wo) store.
    m = jnp.maximum(
        jnp.maximum(act_ref[:, pl.ds(base, HWp)],
                    act_ref[:, pl.ds(base + 1, HWp)]),
        jnp.maximum(act_ref[:, pl.ds(base + Wp, HWp)],
                    act_ref[:, pl.ds(base + Wp + 1, HWp)]))
    pooled = jnp.dot(m.astype(jnp.bfloat16), sel_ref[...],
                     preferred_element_type=jnp.float32)
    o_ref[0, :, :] = pooled.astype(o_ref.dtype)


def conv_block_forward(x, weights, biases, bn_params=None, is_bn=False, eps=1e-5):
    """Forward of `_Conv`: [conv3x3(pad=1) -> (bn) -> relu] * L -> maxpool2x2.

    x        : (N, Cin, H, W) float32, NCHW.
    weights  : list of (Cout, Cin_l, 3, 3);   biases: list of (Cout,)
    bn_params: (gamma, beta, running_mean, running_var), shared across layers exactly
               like the single `self.bn` of the PyTorch module (eval / inference mode).
    """
    N, Cin, H, W = x.shape
    num_layers = len(weights)
    Cout = weights[-1].shape[0]
    Wp, base, off, L = _geom(H, W)
    HWp = H * Wp
    Ho, Wo = H // 2, W // 2
    Cin0_p = _round_up(Cin)
    Cout_p = _round_up(Cout)
    cins_p = [Cin0_p] + [Cout_p] * (num_layers - 1)

    # ---- pack: zero-pad + flatten to the lane-aligned flat layout (pure XLA, one-off).
    xp = jnp.pad(x.astype(jnp.float32), ((0, 0), (0, Cin0_p - Cin), (1, 1), (1, 1)))
    a0 = xp.reshape(N, Cin0_p, (H + 2) * Wp)
    a0 = jnp.pad(a0, ((0, 0), (0, 0), (off, L - off - (H + 2) * Wp)))

    # ---- fold conv bias + eval-mode BN: scale into the weights, keep only a shift.
    if is_bn:
        gamma, beta, mean, var = bn_params
        s = gamma * jax.lax.rsqrt(var + eps)

    flat_inputs = [a0]
    in_specs = [pl.BlockSpec((1, Cin0_p, L), lambda n: (n, 0, 0))]
    for l, (w, b) in enumerate(zip(weights, biases)):
        co, ci = w.shape[0], w.shape[1]
        cin_p = cins_p[l]
        if is_bn:
            w_eff = w * s[:, None, None, None]
            shift = b * s + (beta - mean * s)
        else:
            w_eff = w
            shift = b
        # (Cout, Cin, 3, 3) -> (Cout_p, 9*Cin_p):  column t*Cin_p + c  <->  tap t=ky*3+kx, in-ch c.
        w_k = jnp.transpose(w_eff, (0, 2, 3, 1))                       # (Cout, 3, 3, Cin)
        w_k = jnp.pad(w_k, ((0, Cout_p - co), (0, 0), (0, 0), (0, cin_p - ci)))
        w_k = w_k.reshape(Cout_p, 9 * cin_p).astype(jnp.bfloat16)
        shift_c = jnp.pad(shift.astype(jnp.float32), (0, Cout_p - co)).reshape(Cout_p, 1)
        flat_inputs += [w_k, shift_c]
        in_specs += [pl.BlockSpec((Cout_p, 9 * cin_p), lambda n: (0, 0)),
                     pl.BlockSpec((Cout_p, 1), lambda n: (0, 0))]

    # 0/1 selector for the pool decimation: picks lane 2*yo*Wp + 2*xo for output (yo, xo).
    t_idx = jnp.arange(HWp, dtype=jnp.int32)[:, None]
    q_idx = jnp.arange(Ho * Wo, dtype=jnp.int32)[None, :]
    sel = (t_idx == (2 * (q_idx // Wo) * Wp + 2 * (q_idx % Wo))).astype(jnp.bfloat16)
    flat_inputs.append(sel)
    in_specs.append(pl.BlockSpec((HWp, Ho * Wo), lambda n: (0, 0)))

    kern = functools.partial(_fused_vgg_block_kernel, num_layers=num_layers,
                             cins_p=tuple(cins_p), H=H, W=W, Wp=Wp, base=base)

    out = pl.pallas_call(
        kern,
        out_shape=jax.ShapeDtypeStruct((N, Cout_p, Ho * Wo), jnp.float32),
        grid_spec=pltpu.PrefetchScalarGridSpec(
            num_scalar_prefetch=0,
            grid=(N,),
            in_specs=in_specs,
            out_specs=pl.BlockSpec((1, Cout_p, Ho * Wo), lambda n: (n, 0, 0)),
            scratch_shapes=[
                pltpu.VMEM((Cout_p, L), jnp.float32),             # resident activation (flat)
                pltpu.VMEM((9 * max(cins_p), HWp), jnp.float32),  # im2col staging
            ],
        ),
        # v7x: one sample per TensorCore.  On single-TC v5e/v6e, fold N into the lane
        # dim (grid=(1,)) for larger batches; when scaling H/W/C, tile rows with a
        # 1-row halo and set vmem_limit_bytes (v7x has 64 MiB physical VMEM).
        compiler_params=pltpu.CompilerParams(dimension_semantics=("parallel",)),
    )(*flat_inputs)

    return out.reshape(N, Cout_p, Ho, Wo)[:, :Cout]   # drop channel padding (no-op here)


if __name__ == "__main__":
    # _Conv(in_channel=4, out_channel=8, layer_num=2, is_bn=True) on a (2, 4, 16, 16) input.
    N, Cin, Cout, H, W, layer_num = 2, 4, 8, 16, 16, 2
    is_bn = True
    eps = 1e-5

    key = jax.random.PRNGKey(0)
    keys = jax.random.split(key, 2 * layer_num + 4)

    x = jax.random.normal(keys[0], (N, Cin, H, W), dtype=jnp.float32)

    weights, biases = [], []
    cin = Cin
    for l in range(layer_num):
        fan_in = cin * 9
        bound = 1.0 / (fan_in ** 0.5)
        weights.append(jax.random.uniform(keys[1 + 2 * l], (Cout, cin, 3, 3),
                                          jnp.float32, -bound, bound))
        biases.append(jax.random.uniform(keys[2 + 2 * l], (Cout,),
                                         jnp.float32, -bound, bound))
        cin = Cout

    gamma = jax.random.uniform(keys[-3], (Cout,), jnp.float32, 0.5, 1.5)
    beta = 0.1 * jax.random.normal(keys[-2], (Cout,), dtype=jnp.float32)
    mean = 0.1 * jax.random.normal(keys[-1], (Cout,), dtype=jnp.float32)
    var = jnp.linspace(0.5, 1.5, Cout).astype(jnp.float32)
    bn_params = (gamma, beta, mean, var)

    fwd = jax.jit(functools.partial(conv_block_forward, is_bn=is_bn, eps=eps))
    out = jax.block_until_ready(fwd(x, weights, biases, bn_params))
    assert out.shape == (N, Cout, H // 2, W // 2)

    # Pure-JAX f32 reference with identical (inference-mode BN) semantics.
    r = x
    for w, b in zip(weights, biases):
        r = jax.lax.conv_general_dilated(
            r, w, window_strides=(1, 1), padding=((1, 1), (1, 1)),
            dimension_numbers=("NCHW", "OIHW", "NCHW"))
        r = r + b[None, :, None, None]
        if is_bn:
            r = ((r - mean[None, :, None, None])
                 * jax.lax.rsqrt(var[None, :, None, None] + eps)
                 * gamma[None, :, None, None] + beta[None, :, None, None])
        r = jnp.maximum(r, 0.0)
    r = jax.lax.reduce_window(r, -jnp.inf, jax.lax.max,
                              (1, 1, 2, 2), (1, 1, 2, 2), "VALID")

    # bf16 matmul operands (f32 accumulation) -> compare at bf16-level tolerance.
    assert jnp.allclose(out, r, atol=5e-2, rtol=5e-2), float(jnp.max(jnp.abs(out - r)))
    print("KERNEL_OK")
</pallas_src>

<mosaic_0001>
module attributes {stable_mosaic.version = 11 : i64} {
  func.func @_fused_vgg_block_kernel(%arg0: i32, %arg1: memref<1x8x452xf32, #tpu.memory_space<vmem>>, %arg2: memref<8x72xbf16, #tpu.memory_space<vmem>>, %arg3: memref<8x1xf32, #tpu.memory_space<vmem>>, %arg4: memref<8x72xbf16, #tpu.memory_space<vmem>>, %arg5: memref<8x1xf32, #tpu.memory_space<vmem>>, %arg6: memref<288x64xbf16, #tpu.memory_space<vmem>>, %arg7: memref<1x8x64xf32, #tpu.memory_space<vmem>>, %arg8: memref<8x452xf32, #tpu.memory_space<vmem>>, %arg9: memref<72x288xf32, #tpu.memory_space<vmem>>) attributes {dimension_semantics = [#tpu.dimension_semantics<parallel>], iteration_bounds = array<i64: 2>, scalar_prefetch = 0 : i64, scratch_operands = 2 : i64, tpu.core_type = #tpu.core_type<tc>, window_params = [{transform_indices = @transform_0, window_bounds = array<i64: 1, 8, 452>}, {pipeline_mode = #tpu.pipeline_mode<synchronous>, transform_indices = @transform_1, window_bounds = array<i64: 8, 72>}, {pipeline_mode = #tpu.pipeline_mode<synchronous>, transform_indices = @transform_2, window_bounds = array<i64: 8, 1>}, {pipeline_mode = #tpu.pipeline_mode<synchronous>, transform_indices = @transform_3, window_bounds = array<i64: 8, 72>}, {pipeline_mode = #tpu.pipeline_mode<synchronous>, transform_indices = @transform_4, window_bounds = array<i64: 8, 1>}, {pipeline_mode = #tpu.pipeline_mode<synchronous>, transform_indices = @transform_5, window_bounds = array<i64: 288, 64>}, {transform_indices = @transform_6, window_bounds = array<i64: 1, 8, 64>}]} {
    %cst = arith.constant 0.000000e+00 : f32
    %0 = vector.broadcast %cst : f32 to vector<8x452xf32>
    %c0 = arith.constant 0 : index
    %c0_0 = arith.constant 0 : index
    %1 = vector.load %arg8[%c0, %c0_0] : memref<8x452xf32, #tpu.memory_space<vmem>>, vector<8x452xf32>
    tpu.vector_store %arg8[%c0, %c0_0], %0 {strides = array<i32>} : memref<8x452xf32, #tpu.memory_space<vmem>>, vector<8x452xf32>,
    %2 = tpu.iota {dimensions = array<i32: 1>} : vector<1x288xi32>
    %c18_i32 = arith.constant 18 : i32
    %c0_i32 = arith.constant 0 : i32
    %3 = arith.cmpi eq, %c18_i32, %c0_i32 : i32
    %c1_i32 = arith.constant 1 : i32
    %4 = arith.select %3, %c1_i32, %c18_i32 : i32
    %5 = vector.broadcast %4 : i32 to vector<1x288xi32>
    %6 = arith.remsi %2, %5 : vector<1x288xi32>
    %c0_i32_1 = arith.constant 0 : i32
    %7 = vector.broadcast %c0_i32_1 : i32 to vector<1x288xi32>
    %8 = arith.cmpi ne, %6, %7 : vector<1x288xi32>
    %c0_i32_2 = arith.constant 0 : i32
    %9 = vector.broadcast %c0_i32_2 : i32 to vector<1x288xi32>
    %10 = arith.cmpi slt, %6, %9 : vector<1x288xi32>
    %c0_i32_3 = arith.constant 0 : i32
    %11 = arith.cmpi slt, %4, %c0_i32_3 : i32
    %12 = vector.broadcast %11 : i1 to vector<1x288xi1>
    %13 = vector.broadcast %12 : vector<1x288xi1> to vector<1x288xi1>
    %14 = arith.xori %10, %13 : vector<1x288xi1>
    %15 = arith.andi %14, %8 : vector<1x288xi1>
    %16 = vector.broadcast %4 : i32 to vector<1x288xi32>
    %17 = arith.addi %6, %16 : vector<1x288xi32>
    %18 = arith.select %15, %17, %6 : vector<1x288xi1>, vector<1x288xi32>
    %c16_i32 = arith.constant 16 : i32
    %19 = vector.broadcast %c16_i32 : i32 to vector<1x288xi32>
    %20 = arith.cmpi slt, %18, %19 : vector<1x288xi32>
    %c0_4 = arith.constant 0 : index
    %c0_5 = arith.constant 0 : index
    %c109 = arith.constant 109 : index
    %21 = vector.load %arg1[%c0_4, %c0_5, %c109] : memref<1x8x452xf32, #tpu.memory_space<vmem>>, vector<1x8x288xf32>
    %22 = vector.shape_cast %21 : vector<1x8x288xf32> to vector<8x288xf32>
    %c0_6 = arith.constant 0 : index
    %c0_7 = arith.constant 0 : index
    %23 = vector.load %arg9[%c0_6, %c0_7] : memref<72x288xf32, #tpu.memory_space<vmem>>, vector<8x288xf32>
    tpu.vector_store %arg9[%c0_6, %c0_7], %22 {strides = array<i32>} : memref<72x288xf32, #tpu.memory_space<vmem>>, vector<8x288xf32>,
    %c0_8 = arith.constant 0 : index
    %c0_9 = arith.constant 0 : index
    %c110 = arith.constant 110 : index
    %24 = vector.load %arg1[%c0_8, %c0_9, %c110] : memref<1x8x452xf32, #tpu.memory_space<vmem>>, vector<1x8x288xf32>
    %25 = vector.shape_cast %24 : vector<1x8x288xf32> to vector<8x288xf32>
    %c8 = arith.constant 8 : index
    %c0_10 = arith.constant 0 : index
    %26 = vector.load %arg9[%c8, %c0_10] : memref<72x288xf32, #tpu.memory_space<vmem>>, vector<8x288xf32>
    tpu.vector_store %arg9[%c8, %c0_10], %25 {strides = array<i32>} : memref<72x288xf32, #tpu.memory_space<vmem>>, vector<8x288xf32>,
    %c0_11 = arith.constant 0 : index
    %c0_12 = arith.constant 0 : index
    %c111 = arith.constant 111 : index
    %27 = vector.load %arg1[%c0_11, %c0_12, %c111] : memref<1x8x452xf32, #tpu.memory_space<vmem>>, vector<1x8x288xf32>
    %28 = vector.shape_cast %27 : vector<1x8x288xf32> to vector<8x288xf32>
    %c16 = arith.constant 16 : index
    %c0_13 = arith.constant 0 : index
    %29 = vector.load %arg9[%c16, %c0_13] : memref<72x288xf32, #tpu.memory_space<vmem>>, vector<8x288xf32>
    tpu.vector_store %arg9[%c16, %c0_13], %28 {strides = array<i32>} : memref<72x288xf32, #tpu.memory_space<vmem>>, vector<8x288xf32>,
    %c0_14 = arith.constant 0 : index
    %c0_15 = arith.constant 0 : index
    %c127 = arith.constant 127 : index
    %30 = vector.load %arg1[%c0_14, %c0_15, %c127] : memref<1x8x452xf32, #tpu.memory_space<vmem>>, vector<1x8x288xf32>
    %31 = vector.shape_cast %30 : vector<1x8x288xf32> to vector<8x288xf32>
    %c24 = arith.constant 24 : index
    %c0_16 = arith.constant 0 : index
    %32 = vector.load %arg9[%c24, %c0_16] : memref<72x288xf32, #tpu.memory_space<vmem>>, vector<8x288xf32>
    tpu.vector_store %arg9[%c24, %c0_16], %31 {strides = array<i32>} : memref<72x288xf32, #tpu.memory_space<vmem>>, vector<8x288xf32>,
    %c0_17 = arith.constant 0 : index
    %c0_18 = arith.constant 0 : index
    %c128 = arith.constant 128 : index
    %33 = vector.load %arg1[%c0_17, %c0_18, %c128] : memref<1x8x452xf32, #tpu.memory_space<vmem>>, vector<1x8x288xf32>
    %34 = vector.shape_cast %33 : vector<1x8x288xf32> to vector<8x288xf32>
    %c32 = arith.constant 32 : index
    %c0_19 = arith.constant 0 : index
    %35 = vector.load %arg9[%c32, %c0_19] : memref<72x288xf32, #tpu.memory_space<vmem>>, vector<8x288xf32>
    tpu.vector_store %arg9[%c32, %c0_19], %34 {strides = array<i32>} : memref<72x288xf32, #tpu.memory_space<vmem>>, vector<8x288xf32>,
    %c0_20 = arith.constant 0 : index
    %c0_21 = arith.constant 0 : index
    %c129 = arith.constant 129 : index
    %36 = vector.load %arg1[%c0_20, %c0_21, %c129] : memref<1x8x452xf32, #tpu.memory_space<vmem>>, vector<1x8x288xf32>
    %37 = vector.shape_cast %36 : vector<1x8x288xf32> to vector<8x288xf32>
    %c40 = arith.constant 40 : index
    %c0_22 = arith.constant 0 : index
    %38 = vector.load %arg9[%c40, %c0_22] : memref<72x288xf32, #tpu.memory_space<vmem>>, vector<8x288xf32>
    tpu.vector_store %arg9[%c40, %c0_22], %37 {strides = array<i32>} : memref<72x288xf32, #tpu.memory_space<vmem>>, vector<8x288xf32>,
    %c0_23 = arith.constant 0 : index
    %c0_24 = arith.constant 0 : index
    %c145 = arith.constant 145 : index
    %39 = vector.load %arg1[%c0_23, %c0_24, %c145] : memref<1x8x452xf32, #tpu.memory_space<vmem>>, vector<1x8x288xf32>
    %40 = vector.shape_cast %39 : vector<1x8x288xf32> to vector<8x288xf32>
    %c48 = arith.constant 48 : index
    %c0_25 = arith.constant 0 : index
    %41 = vector.load %arg9[%c48, %c0_25] : memref<72x288xf32, #tpu.memory_space<vmem>>, vector<8x288xf32>
    tpu.vector_store %arg9[%c48, %c0_25], %40 {strides = array<i32>} : memref<72x288xf32, #tpu.memory_space<vmem>>, vector<8x288xf32>,
    %c0_26 = arith.constant 0 : index
    %c0_27 = arith.constant 0 : index
    %c146 = arith.constant 146 : index
    %42 = vector.load %arg1[%c0_26, %c0_27, %c146] : memref<1x8x452xf32, #tpu.memory_space<vmem>>, vector<1x8x288xf32>
    %43 = vector.shape_cast %42 : vector<1x8x288xf32> to vector<8x288xf32>
    %c56 = arith.constant 56 : index
    %c0_28 = arith.constant 0 : index
    %44 = vector.load %arg9[%c56, %c0_28] : memref<72x288xf32, #tpu.memory_space<vmem>>, vector<8x288xf32>
    tpu.vector_store %arg9[%c56, %c0_28], %43 {strides = array<i32>} : memref<72x288xf32, #tpu.memory_space<vmem>>, vector<8x288xf32>,
    %c0_29 = arith.constant 0 : index
    %c0_30 = arith.constant 0 : index
    %c147 = arith.constant 147 : index
    %45 = vector.load %arg1[%c0_29, %c0_30, %c147] : memref<1x8x452xf32, #tpu.memory_space<vmem>>, vector<1x8x288xf32>
    %46 = vector.shape_cast %45 : vector<1x8x288xf32> to vector<8x288xf32>
    %c64 = arith.constant 64 : index
    %c0_31 = arith.constant 0 : index
    %47 = vector.load %arg9[%c64, %c0_31] : memref<72x288xf32, #tpu.memory_space<vmem>>, vector<8x288xf32>
    tpu.vector_store %arg9[%c64, %c0_31], %46 {strides = array<i32>} : memref<72x288xf32, #tpu.memory_space<vmem>>, vector<8x288xf32>,
    %c0_32 = arith.constant 0 : index
    %c0_33 = arith.constant 0 : index
    %48 = vector.load %arg2[%c0_32, %c0_33] : memref<8x72xbf16, #tpu.memory_space<vmem>>, vector<8x72xbf16>
    %c0_34 = arith.constant 0 : index
    %c0_35 = arith.constant 0 : index
    %49 = vector.load %arg9[%c0_34, %c0_35] : memref<72x288xf32, #tpu.memory_space<vmem>>, vector<72x288xf32>
    %50 = arith.truncf %49 : vector<72x288xf32> to vector<72x288xbf16>
    %cst_36 = arith.constant dense<0.000000e+00> : vector<8x288xf32>
    %51 = tpu.matmul %48, %50, %cst_36 {dimension_numbers = #tpu.dot_dimension_numbers<[1], [0], [0], [1], [0, 0, 1, 1], [], []>} : vector<8x72xbf16>, vector<72x288xbf16>, vector<8x288xf32> -> vector<8x288xf32>
    %c0_37 = arith.constant 0 : index
    %c0_38 = arith.constant 0 : index
    %52 = vector.load %arg3[%c0_37, %c0_38] : memref<8x1xf32, #tpu.memory_space<vmem>>, vector<8x1xf32>
    %53 = vector.broadcast %52 : vector<8x1xf32> to vector<8x288xf32>
    %54 = arith.addf %51, %53 : vector<8x288xf32>
    %cst_39 = arith.constant 0.000000e+00 : f32
    %55 = vector.broadcast %cst_39 : f32 to vector<8x288xf32>
    %56 = arith.maximumf %54, %55 : vector<8x288xf32>
    %cst_40 = arith.constant 0.000000e+00 : f32
    %57 = vector.shape_cast %20 : vector<1x288xi1> to vector<1x288xi1>
    %58 = vector.broadcast %57 : vector<1x288xi1> to vector<8x288xi1>
    %59 = vector.broadcast %cst_40 : f32 to vector<8x288xf32>
    %60 = arith.select %58, %56, %59 : vector<8x288xi1>, vector<8x288xf32>
    %c0_41 = arith.constant 0 : index
    %c128_42 = arith.constant 128 : index
    %61 = vector.load %arg8[%c0_41, %c128_42] : memref<8x452xf32, #tpu.memory_space<vmem>>, vector<8x288xf32>
    tpu.vector_store %arg8[%c0_41, %c128_42], %60 {strides = array<i32>} : memref<8x452xf32, #tpu.memory_space<vmem>>, vector<8x288xf32>,
    %c0_43 = arith.constant 0 : index
    %c109_44 = arith.constant 109 : index
    %62 = vector.load %arg8[%c0_43, %c109_44] : memref<8x452xf32, #tpu.memory_space<vmem>>, vector<8x288xf32>
    %c0_45 = arith.constant 0 : index
    %c0_46 = arith.constant 0 : index
    %63 = vector.load %arg9[%c0_45, %c0_46] : memref<72x288xf32, #tpu.memory_space<vmem>>, vector<8x288xf32>
    tpu.vector_store %arg9[%c0_45, %c0_46], %62 {strides = array<i32>} : memref<72x288xf32, #tpu.memory_space<vmem>>, vector<8x288xf32>,
    %c0_47 = arith.constant 0 : index
    %c110_48 = arith.constant 110 : index
    %64 = vector.load %arg8[%c0_47, %c110_48] : memref<8x452xf32, #tpu.memory_space<vmem>>, vector<8x288xf32>
    %c8_49 = arith.constant 8 : index
    %c0_50 = arith.constant 0 : index
    %65 = vector.load %arg9[%c8_49, %c0_50] : memref<72x288xf32, #tpu.memory_space<vmem>>, vector<8x288xf32>
    tpu.vector_store %arg9[%c8_49, %c0_50], %64 {strides = array<i32>} : memref<72x288xf32, #tpu.memory_space<vmem>>, vector<8x288xf32>,
    %c0_51 = arith.constant 0 : index
    %c111_52 = arith.constant 111 : index
    %66 = vector.load %arg8[%c0_51, %c111_52] : memref<8x452xf32, #tpu.memory_space<vmem>>, vector<8x288xf32>
    %c16_53 = arith.constant 16 : index
    %c0_54 = arith.constant 0 : index
    %67 = vector.load %arg9[%c16_53, %c0_54] : memref<72x288xf32, #tpu.memory_space<vmem>>, vector<8x288xf32>
    tpu.vector_store %arg9[%c16_53, %c0_54], %66 {strides = array<i32>} : memref<72x288xf32, #tpu.memory_space<vmem>>, vector<8x288xf32>,
    %c0_55 = arith.constant 0 : index
    %c127_56 = arith.constant 127 : index
    %68 = vector.load %arg8[%c0_55, %c127_56] : memref<8x452xf32, #tpu.memory_space<vmem>>, vector<8x288xf32>
    %c24_57 = arith.constant 24 : index
    %c0_58 = arith.constant 0 : index
    %69 = vector.load %arg9[%c24_57, %c0_58] : memref<72x288xf32, #tpu.memory_space<vmem>>, vector<8x288xf32>
    tpu.vector_store %arg9[%c24_57, %c0_58], %68 {strides = array<i32>} : memref<72x288xf32, #tpu.memory_space<vmem>>, vector<8x288xf32>,
    %c0_59 = arith.constant 0 : index
    %c128_60 = arith.constant 128 : index
    %70 = vector.load %arg8[%c0_59, %c128_60] : memref<8x452xf32, #tpu.memory_space<vmem>>, vector<8x288xf32>
    %c32_61 = arith.constant 32 : index
    %c0_62 = arith.constant 0 : index
    %71 = vector.load %arg9[%c32_61, %c0_62] : memref<72x288xf32, #tpu.memory_space<vmem>>, vector<8x288xf32>
    tpu.vector_store %arg9[%c32_61, %c0_62], %70 {strides = array<i32>} : memref<72x288xf32, #tpu.memory_space<vmem>>, vector<8x288xf32>,
    %c0_63 = arith.constant 0 : index
    %c129_64 = arith.constant 129 : index
    %72 = vector.load %arg8[%c0_63, %c129_64] : memref<8x452xf32, #tpu.memory_space<vmem>>, vector<8x288xf32>
    %c40_65 = arith.constant 40 : index
    %c0_66 = arith.constant 0 : index
    %73 = vector.load %arg9[%c40_65, %c0_66] : memref<72x288xf32, #tpu.memory_space<vmem>>, vector<8x288xf32>
    tpu.vector_store %arg9[%c40_65, %c0_66], %72 {strides = array<i32>} : memref<72x288xf32, #tpu.memory_space<vmem>>, vector<8x288xf32>,
    %c0_67 = arith.constant 0 : index
    %c145_68 = arith.constant 145 : index
    %74 = vector.load %arg8[%c0_67, %c145_68] : memref<8x452xf32, #tpu.memory_space<vmem>>, vector<8x288xf32>
    %c48_69 = arith.constant 48 : index
    %c0_70 = arith.constant 0 : index
    %75 = vector.load %arg9[%c48_69, %c0_70] : memref<72x288xf32, #tpu.memory_space<vmem>>, vector<8x288xf32>
    tpu.vector_store %arg9[%c48_69, %c0_70], %74 {strides = array<i32>} : memref<72x288xf32, #tpu.memory_space<vmem>>, vector<8x288xf32>,
    %c0_71 = arith.constant 0 : index
    %c146_72 = arith.constant 146 : index
    %76 = vector.load %arg8[%c0_71, %c146_72] : memref<8x452xf32, #tpu.memory_space<vmem>>, vector<8x288xf32>
    %c56_73 = arith.constant 56 : index
    %c0_74 = arith.constant 0 : index
    %77 = vector.load %arg9[%c56_73, %c0_74] : memref<72x288xf32, #tpu.memory_space<vmem>>, vector<8x288xf32>
    tpu.vector_store %arg9[%c56_73, %c0_74], %76 {strides = array<i32>} : memref<72x288xf32, #tpu.memory_space<vmem>>, vector<8x288xf32>,
    %c0_75 = arith.constant 0 : index
    %c147_76 = arith.constant 147 : index
    %78 = vector.load %arg8[%c0_75, %c147_76] : memref<8x452xf32, #tpu.memory_space<vmem>>, vector<8x288xf32>
    %c64_77 = arith.constant 64 : index
    %c0_78 = arith.constant 0 : index
    %79 = vector.load %arg9[%c64_77, %c0_78] : memref<72x288xf32, #tpu.memory_space<vmem>>, vector<8x288xf32>
    tpu.vector_store %arg9[%c64_77, %c0_78], %78 {strides = array<i32>} : memref<72x288xf32, #tpu.memory_space<vmem>>, vector<8x288xf32>,
    %c0_79 = arith.constant 0 : index
    %c0_80 = arith.constant 0 : index
    %80 = vector.load %arg4[%c0_79, %c0_80] : memref<8x72xbf16, #tpu.memory_space<vmem>>, vector<8x72xbf16>
    %c0_81 = arith.constant 0 : index
    %c0_82 = arith.constant 0 : index
    %81 = vector.load %arg9[%c0_81, %c0_82] : memref<72x288xf32, #tpu.memory_space<vmem>>, vector<72x288xf32>
    %82 = arith.truncf %81 : vector<72x288xf32> to vector<72x288xbf16>
    %cst_83 = arith.constant dense<0.000000e+00> : vector<8x288xf32>
    %83 = tpu.matmul %80, %82, %cst_83 {dimension_numbers = #tpu.dot_dimension_numbers<[1], [0], [0], [1], [0, 0, 1, 1], [], []>} : vector<8x72xbf16>, vector<72x288xbf16>, vector<8x288xf32> -> vector<8x288xf32>
    %c0_84 = arith.constant 0 : index
    %c0_85 = arith.constant 0 : index
    %84 = vector.load %arg5[%c0_84, %c0_85] : memref<8x1xf32, #tpu.memory_space<vmem>>, vector<8x1xf32>
    %85 = vector.broadcast %84 : vector<8x1xf32> to vector<8x288xf32>
    %86 = arith.addf %83, %85 : vector<8x288xf32>
    %cst_86 = arith.constant 0.000000e+00 : f32
    %87 = vector.broadcast %cst_86 : f32 to vector<8x288xf32>
    %88 = arith.maximumf %86, %87 : vector<8x288xf32>
    %cst_87 = arith.constant 0.000000e+00 : f32
    %89 = vector.shape_cast %20 : vector<1x288xi1> to vector<1x288xi1>
    %90 = vector.broadcast %89 : vector<1x288xi1> to vector<8x288xi1>
    %91 = vector.broadcast %cst_87 : f32 to vector<8x288xf32>
    %92 = arith.select %90, %88, %91 : vector<8x288xi1>, vector<8x288xf32>
    %c0_88 = arith.constant 0 : index
    %c128_89 = arith.constant 128 : index
    %93 = vector.load %arg8[%c0_88, %c128_89] : memref<8x452xf32, #tpu.memory_space<vmem>>, vector<8x288xf32>
    tpu.vector_store %arg8[%c0_88, %c128_89], %92 {strides = array<i32>} : memref<8x452xf32, #tpu.memory_space<vmem>>, vector<8x288xf32>,
    %c0_90 = arith.constant 0 : index
    %c128_91 = arith.constant 128 : index
    %94 = vector.load %arg8[%c0_90, %c128_91] : memref<8x452xf32, #tpu.memory_space<vmem>>, vector<8x288xf32>
    %c0_92 = arith.constant 0 : index
    %c129_93 = arith.constant 129 : index
    %95 = vector.load %arg8[%c0_92, %c129_93] : memref<8x452xf32, #tpu.memory_space<vmem>>, vector<8x288xf32>
    %96 = arith.maximumf %94, %95 : vector<8x288xf32>
    %c0_94 = arith.constant 0 : index
    %c146_95 = arith.constant 146 : index
    %97 = vector.load %arg8[%c0_94, %c146_95] : memref<8x452xf32, #tpu.memory_space<vmem>>, vector<8x288xf32>
    %c0_96 = arith.constant 0 : index
    %c147_97 = arith.constant 147 : index
    %98 = vector.load %arg8[%c0_96, %c147_97] : memref<8x452xf32, #tpu.memory_space<vmem>>, vector<8x288xf32>
    %99 = arith.maximumf %97, %98 : vector<8x288xf32>
    %100 = arith.maximumf %96, %99 : vector<8x288xf32>
    %101 = arith.truncf %100 : vector<8x288xf32> to vector<8x288xbf16>
    %c0_98 = arith.constant 0 : index
    %c0_99 = arith.constant 0 : index
    %102 = vector.load %arg6[%c0_98, %c0_99] : memref<288x64xbf16, #tpu.memory_space<vmem>>, vector<288x64xbf16>
    %cst_100 = arith.constant dense<0.000000e+00> : vector<8x64xf32>
    %103 = tpu.matmul %101, %102, %cst_100 {dimension_numbers = #tpu.dot_dimension_numbers<[1], [0], [0], [1], [0, 0, 1, 1], [], []>} : vector<8x288xbf16>, vector<288x64xbf16>, vector<8x64xf32> -> vector<8x64xf32>
    %c0_101 = arith.constant 0 : index
    %c0_102 = arith.constant 0 : index
    %c0_103 = arith.constant 0 : index
    %104 = vector.load %arg7[%c0_101, %c0_102, %c0_103] : memref<1x8x64xf32, #tpu.memory_space<vmem>>, vector<1x8x64xf32>
    %105 = vector.shape_cast %104 : vector<1x8x64xf32> to vector<8x64xf32>
    %106 = vector.shape_cast %103 : vector<8x64xf32> to vector<1x8x64xf32>
    tpu.vector_store %arg7[%c0_101, %c0_102, %c0_103], %106 {strides = array<i32>} : memref<1x8x64xf32, #tpu.memory_space<vmem>>, vector<1x8x64xf32>,
    return
  }
  func.func @transform_0(%arg0: i32) -> (i32, i32, i32) {
    %c0_i32 = arith.constant 0 : i32
    %c0_i32_0 = arith.constant 0 : i32
    %c0_i32_1 = arith.constant 0 : i32
    return %arg0, %c0_i32, %c0_i32_0 : i32, i32, i32
  }
  func.func @transform_1(%arg0: i32) -> (i32, i32) {
    %c0_i32 = arith.constant 0 : i32
    %c0_i32_0 = arith.constant 0 : i32
    %c0_i32_1 = arith.constant 0 : i32
    return %c0_i32, %c0_i32_0 : i32, i32
  }
  func.func @transform_2(%arg0: i32) -> (i32, i32) {
    %c0_i32 = arith.constant 0 : i32
    %c0_i32_0 = arith.constant 0 : i32
    %c0_i32_1 = arith.constant 0 : i32
    return %c0_i32, %c0_i32_0 : i32, i32
  }
  func.func @transform_3(%arg0: i32) -> (i32, i32) {
    %c0_i32 = arith.constant 0 : i32
    %c0_i32_0 = arith.constant 0 : i32
    %c0_i32_1 = arith.constant 0 : i32
    return %c0_i32, %c0_i32_0 : i32, i32
  }
  func.func @transform_4(%arg0: i32) -> (i32, i32) {
    %c0_i32 = arith.constant 0 : i32
    %c0_i32_0 = arith.constant 0 : i32
    %c0_i32_1 = arith.constant 0 : i32
    return %c0_i32, %c0_i32_0 : i32, i32
  }
  func.func @transform_5(%arg0: i32) -> (i32, i32) {
    %c0_i32 = arith.constant 0 : i32
    %c0_i32_0 = arith.constant 0 : i32
    %c0_i32_1 = arith.constant 0 : i32
    return %c0_i32, %c0_i32_0 : i32, i32
  }
  func.func @transform_6(%arg0: i32) -> (i32, i32, i32) {
    %c0_i32 = arith.constant 0 : i32
    %c0_i32_0 = arith.constant 0 : i32
    %c0_i32_1 = arith.constant 0 : i32
    return %arg0, %c0_i32, %c0_i32_0 : i32, i32, i32
  }
}

</mosaic_0001>

<bundles_post_ra>
// kernel: conv_block_forward.1
= control target key start
LH: loop header
LB: loop body
LE: loop exit
PB: predicated region body
PF: predicated region fallthrough
CT: control target
= control target key end

     0   :  { %s1548_s21 = smov 0   ;;  %s1875_s0 = inlined_call_operand.vmem [shape: f32[2,8,452], index: 0, kind: input, shape index: {}]   ;;  %s1876_s1 = inlined_call_operand.vmem [shape: bf16[8,72], index: 1, kind: input, shape index: {}]   ;;  %s1877_s2 = inlined_call_operand.vmem [shape: f32[8,1], index: 2, kind: input, shape index: {}]   ;;  %s1878_s3 = inlined_call_operand.vmem [shape: bf16[8,72], index: 3, kind: input, shape index: {}]   ;;  %s1879_s4 = inlined_call_operand.vmem [shape: f32[8,1], index: 4, kind: input, shape index: {}]   ;;  %s1880_s5 = inlined_call_operand.vmem [shape: bf16[288,64], index: 5, kind: input, shape index: {}]   ;;  %s1881_s6 = inlined_call_operand.vmem [shape: f32[2,8,64], index: 6, kind: output, shape index: {}]  }
   0x1 LB: > { %s1324_s22 = sadd.s32 4294967295, %s1499_s21   ;;  %p1328_p0 = scmp.ge.s32.totalorder %s1499_s21, 1  ;;  %s1499_s21 = sphi %s1548_s21, %s16_s21  }
   0x2   : > { %p212_p1 = scmp.lt.s32.totalorder %s1499_s21, 3 }
   0x4   : > { %p213_p2 = pnand %p1328_p0, %p212_p1 }
   0x5   : > { %p241_p3 = scmp.lt.s32.totalorder (!%p213_p2), %s1324_s22, 1  ;;  %s1501_s27 = smov (!%p213_p2), 109  }
   0x6   : > { %216 = sbr.rel (%p213_p2) target bundleno = 1219 (0x4c3), region = 44  ;;  %s1502_s28 = smov (!%p213_p2), 111  }
   0x7   : > { %s1503_s29 = smov (!%p213_p2), 110   ;;  %s1504_s30 = smov (!%p213_p2), 127  }
   0x8   : > { %s1505_s7 = smov (!%p213_p2), 17   ;;  %s1506_s8 = smov (!%p213_p2), 1  }
   0x9   : > { %s1507_s9 = smov (!%p213_p2), 19   ;;  %s1509_s10 = smov (!%p213_p2), 18  }
   0xb   : > { %s1898_s22 = smov (!%p241_p3, %s1324_s22), 1  ;;  %vm336_vm0 = vcmask 261120   ;;  %v1508_v4 = vmov 0   ;;  %v1510_v5 = vmov 0.0   ;;  %v549_v6 = vld [vmem:[%s1877_s2] sm:$0xff]  ;;  %vm497_vm1 = vcmask 891904  }
   0xc   : > { %s1359_s23 = sshll.u32 %s1898_s22, 5  ;;  %601 = vmatprep.mubr.bf16.mxu1 %v1508_v4  ;;  %1458 = vset.pattern.permute.xlu0 %v1508_v4  ;;  %vm559_vm2 = vcmask 1043456   ;;  %vm455_vm3 = vcmask 908288   ;;  %vm476_vm4 = vcmask 900096   ;;  %vm434_vm5 = vcmask 1039360   ;;  %s1331_s13 = sshll.u32 %s1898_s22, 3 }
   0xd   : > { %s245_s26 = scalar_lea.vmem %s1875_s0, %s1359_s23  ;;  %944 = vmatprep.mubr.bf16.mxu0 %v1508_v4  ;;  %vm380_vm6 = vcmask 138240   ;;  %vm406_vm7 = vcmask 7168   ;;  %vm327_vm8 = vcmask 154624   ;;  %vm1884_vm9 = vcmask 146432   ;;  %v506_v62 = vld [vmem:[%s1876_s1] sm:$0xf]  ;;  %s249_s16 = scalar_lea.vmem %s1881_s6, %s1331_s13 }
   0xe   : > { %v487_v0 = vld [vmem:[%s245_s26 + $0x18] sm:$0xff]  ;;  %v1562_v1 = vld [vmem:[%s245_s26 + $0x8] sm:$0xff]  ;;  %v1567_v2 = vld [vmem:[%s245_s26 + $0x10] sm:$0xff]  ;;  %vm1883_vm10 = vcmask 588800   ;;  %vm1882_vm11 = vmmov 0   ;;  %vm254_vm12 = vcmask 556032  }
   0xf   : > { %495 = vrot.lane.b32.xlu1 %v487_v0, %s1501_s27  ;;  %491 = vrot.lane.b32.xlu0 %v1562_v1, %s1501_s27  ;;  %421 = vst.msk [vmem:[#allocation3 + $0x70] sm:$0xff] %vm336_vm0, %v487_v0  ;;  %v390_v3 = vld [vmem:[%s245_s26] sm:$0xff] }
  0x10   : > { %255 = vst.msk [vmem:[#allocation2 + $0x18] sm:$0xff] %vm254_vm12, %v1510_v5 }
  0x13   : > { %493 = vrot.lane.b32.xlu0 %v1567_v2, %s1501_s27  ;;  %451 = vrot.lane.b32.xlu1 %v1567_v2, %s1502_s28 }
  0x17   : > { %453 = vrot.lane.b32.xlu0 %v487_v0, %s1502_s28  ;;  %472 = vrot.lane.b32.xlu1 %v1567_v2, %s1503_s29 }
  0x1b   : > { %474 = vrot.lane.b32.xlu0 %v487_v0, %s1503_s29  ;;  %449 = vrot.lane.b32.xlu1 %v1562_v1, %s1502_s28 }
  0x1f   : > { %470 = vrot.lane.b32.xlu0 %v1562_v1, %s1503_s29  ;;  %430 = vrot.lane.b32.xlu1 %v1567_v2, %s1504_s30 }
  0x23   : > { %432 = vrot.lane.b32.xlu0 %v487_v0, %s1504_s30  ;;  %428 = vrot.lane.b32.xlu1 %v1562_v1, %s1504_s30 }
  0x27   : > { %376 = vrot.lane.b32.xlu1 %v1567_v2, %s1505_s7  ;;  %374 = vrot.lane.b32.xlu0 %v1562_v1, %s1505_s7 }
  0x2b   : > { %402 = vrot.lane.b32.xlu1 %v1567_v2, %s1506_s8  ;;  %400 = vrot.lane.b32.xlu0 %v1562_v1, %s1506_s8 }
  0x2f   : > { %398 = vrot.lane.b32.xlu1 %v390_v3, %s1506_s8  ;;  %372 = vrot.lane.b32.xlu0 %v390_v3, %s1505_s7 }
  0x33   : > { %323 = vrot.lane.b32.xlu1 %v1567_v2, %s1507_s9  ;;  %321 = vrot.lane.b32.xlu0 %v1562_v1, %s1507_s9 }
  0x37   : > { %350 = vrot.lane.b32.xlu1 %v1567_v2, %s1509_s10  ;;  %348 = vrot.lane.b32.xlu0 %v1562_v1, %s1509_s10 }
  0x3b   : > { %346 = vrot.lane.b32.xlu1 %v390_v3, %s1509_s10  ;;  %319 = vrot.lane.b32.xlu0 %v390_v3, %s1507_s9 }
  0x3f   : > { %404 = vrot.lane.b32.xlu1 %v487_v0, %s1506_s8  ;;  %378 = vrot.lane.b32.xlu0 %v487_v0, %s1505_s7 }
  0x43   : > { %352 = vrot.lane.b32.xlu1 %v487_v0, %s1509_s10  ;;  %325 = vrot.lane.b32.xlu0 %v487_v0, %s1507_s9 }
  0x47   : > { %748 = vrot.lane.b32.xlu1 %v1510_v5, %s1506_s8  ;;  %552 = vperm.xlu0 %1458, %v549_v6  }
  0x4b   : > { %723 = vrot.lane.b32.xlu0 %v1510_v5, %s1505_s7 }
  0x81   : > { %v496_v7 = vpop.permute.xlu1 %495  ;;  %v492_v8 = vpop.permute.xlu0 %491 }
  0x82   : > { %505 = vst.msk [vmem:[#allocation3 + $0xd0] sm:$0xff] %vm336_vm0, %v496_v7 }
  0x85   : > { %v494_v9 = vpop.permute.xlu0 %493  ;;  %v452_v10 = vpop.permute.xlu1 %451 }
  0x86   : > { %v498_v11 = vsel %vm497_vm1, %v492_v8, %v494_v9  ;;  %v499_v12 = vsel %vm497_vm1, %v494_v9, %v496_v7 }
  0x87   : > { %v547_v13 = vpack.c.bf16 %v499_v12, %v499_v12  ;;  %v546_v14 = vpack.c.bf16 %v498_v11, %v498_v11 }
  0x89   : > { %v454_v15 = vpop.permute.xlu0 %453  ;;  %v473_v16 = vpop.permute.xlu1 %472  ;;  %1332 = vmatprep.subr.msk.bf16.mxu1 %vm559_vm2, %v547_v13  ;;  %v561_v17 = vsel %vm559_vm2, %v546_v14, 0  ;;  %v533_v55 = vld [vmem:[#allocation3 + $0xd0] sm:$0xff] }
  0x8a   : > { %463 = vst.msk [vmem:[#allocation3 + $0xa0] sm:$0xff] %vm336_vm0, %v454_v15  ;;  %576 = vmatpush1.bf16.msra.mxu1 %v561_v17  ;;  %v457_v20 = vsel %vm455_vm3, %v452_v10, %v454_v15  ;;  %v548_v59 = vpack.c.bf16 %v533_v55, %v533_v55 }
  0x8d   : > { %v475_v18 = vpop.permute.xlu0 %474  ;;  %v450_v19 = vpop.permute.xlu1 %449 }
  0x8e   : > { %v478_v21 = vsel %vm476_vm4, %v473_v16, %v475_v18  ;;  %484 = vst.msk [vmem:[#allocation3 + $0xb8] sm:$0xff] %vm336_vm0, %v475_v18  ;;  %v456_v25 = vsel %vm455_vm3, %v450_v19, %v452_v10  ;;  %v521_v10 = vld [vmem:[#allocation3 + $0x70] sm:$0xff]  ;;  %v256_v19 = vlaneseq }
  0x8f   : > { %v544_v22 = vpack.c.bf16 %v478_v21, %v457_v20 }
  0x90   : > { %v257_v20 = vand.u32 127, %v256_v19 }
  0x91   : > { %v471_v23 = vpop.permute.xlu0 %470  ;;  %v431_v24 = vpop.permute.xlu1 %430  ;;  %577 = vmatprep.subr.bf16.mxu1 %v544_v22  ;;  %v527_v8 = vld [vmem:[#allocation3 + $0xa0] sm:$0xff] }
  0x92   : > { %v477_v26 = vsel %vm476_vm4, %v471_v23, %v473_v16  ;;  %v258_v21 = vadd.s32 128, %v257_v20  ;;  %v1667_v22 = vmul.u32.u64.low 3817748708, %v257_v20  ;;  %v1668_v23 = vmul.u32.u64.high 3817748708, %v257_v20, %v1667_v22 }
  0x93   : > { %v543_v27 = vpack.c.bf16 %v477_v26, %v456_v25 }
  0x94   : > { %v266_v26 = vshrl.u32 %v1668_v23, 4 }
  0x95   : > { %v433_v28 = vpop.permute.xlu0 %432  ;;  %v429_v29 = vpop.permute.xlu1 %428  ;;  %578 = vmatpush1.bf16.msra.mxu1 %v543_v27 }
  0x96   : > { %v436_v30 = vsel %vm434_vm5, %v431_v24, %v433_v28  ;;  %442 = vst.msk [vmem:[#allocation3 + $0x88] sm:$0xff] %vm336_vm0, %v433_v28  ;;  %v435_v31 = vsel %vm434_vm5, %v429_v29, %v431_v24  ;;  %v1670_v24 = vmul.u32.u64.low 3817748708, %v258_v21  ;;  %v1671_v25 = vmul.u32.u64.high 3817748708, %v258_v21, %v1670_v24 }
  0x97   : > { %v541_v32 = vpack.c.bf16 %v436_v30, %v1567_v2  ;;  %v540_v33 = vpack.c.bf16 %v435_v31, %v1562_v1  ;;  %v567_v1 = vsel %vm559_vm2, %v548_v59, 0  ;;  %v530_v2 = vld [vmem:[#allocation3 + $0xb8] sm:$0xff]  ;;  %v267_v28 = vmul.u32 18, %v266_v26  ;;  %v1472_v59 = vld [vmem:[%s1880_s5 + $0x30] sm:$0xff]  }
  0x98   : > { %v545_v9 = vpack.c.bf16 %v530_v2, %v527_v8  ;;  %v277_v27 = vshrl.u32 %v1671_v25, 4  ;;  %v259_v31 = vadd.s32 256, %v257_v20  ;;  %v894_v2 = vld [vmem:[%s1879_s4] sm:$0xff] }
  0x99   : > { %v377_v34 = vpop.permute.xlu1 %376  ;;  %v375_v35 = vpop.permute.xlu0 %374  ;;  %579 = vmatprep.subr.bf16.mxu1 %v541_v32  ;;  %v268_v30 = vsub.s32 %v257_v20, %v267_v28 }
  0x9a   : > { %580 = vmatpush1.bf16.msra.mxu1 %v540_v33  ;;  %v382_v38 = vsel %vm380_vm6, %v375_v35, %v377_v34  ;;  %v278_v29 = vmul.u32 18, %v277_v27 }
  0x9b   : > { %vm293_vm13 = vcmp.ne.s32.totalorder %v268_v30, 0  ;;  %vm296_vm14 = vcmp.lt.s32.totalorder %v268_v30, 0 }
  0x9c   : > { %v279_v32 = vsub.s32 %v258_v21, %v278_v29 }
  0x9d   : > { %v403_v36 = vpop.permute.xlu1 %402  ;;  %v401_v37 = vpop.permute.xlu0 %400  ;;  %v524_v11 = vld [vmem:[#allocation3 + $0x88] sm:$0xff] }
  0x9e   : > { %v408_v39 = vsel %vm406_vm7, %v401_v37, %v403_v36  ;;  %v542_v12 = vpack.c.bf16 %v524_v11, %v521_v10  ;;  %vm294_vm15 = vcmp.ne.s32.totalorder %v279_v32, 0  ;;  %vm297_vm12 = vcmp.lt.s32.totalorder %v279_v32, 0 }
  0x9f   : > { %v538_v40 = vpack.c.bf16 %v408_v39, %v382_v38 }
  0xa1   : > { %v399_v41 = vpop.permute.xlu1 %398  ;;  %v373_v42 = vpop.permute.xlu0 %372  ;;  %581 = vmatprep.subr.bf16.mxu1 %v538_v40 }
  0xa2   : > { %v407_v43 = vsel %vm406_vm7, %v399_v41, %v401_v37  ;;  %v381_v44 = vsel %vm380_vm6, %v373_v42, %v375_v35  ;;  %v302_v35 = vadd.s32 18, %v268_v30 }
  0xa3   : > { %v537_v45 = vpack.c.bf16 %v407_v43, %v381_v44  ;;  %v1469_v43 = vld [vmem:[%s1880_s5 + $0x78] sm:$0xff]  }
  0xa5   : > { %v324_v46 = vpop.permute.xlu1 %323  ;;  %v322_v47 = vpop.permute.xlu0 %321  ;;  %582 = vmatpush1.bf16.msra.mxu1 %v537_v45 }
  0xa6   : > { %v329_v50 = vsel %vm327_vm8, %v322_v47, %v324_v46 }
  0xa9   : > { %v351_v48 = vpop.permute.xlu1 %350  ;;  %v349_v49 = vpop.permute.xlu0 %348 }
  0xaa   : > { %v356_v51 = vsel %vm1884_vm9, %v349_v49, %v351_v48 }
  0xab   : > { %v535_v52 = vpack.c.bf16 %v356_v51, %v329_v50 }
  0xad   : > { %v347_v53 = vpop.permute.xlu1 %346  ;;  %v320_v54 = vpop.permute.xlu0 %319  ;;  %583 = vmatprep.subr.bf16.mxu1 %v535_v52 }
  0xae   : > { %v355_v56 = vsel %vm1884_vm9, %v347_v53, %v349_v49  ;;  %v328_v57 = vsel %vm327_vm8, %v320_v54, %v322_v47  ;;  %v1470_v47 = vld [vmem:[%s1880_s5 + $0x38] sm:$0xff]  }
  0xaf   : > { %v534_v58 = vpack.c.bf16 %v355_v56, %v328_v57 }
  0xb1   : > { %v405_v60 = vpop.permute.xlu1 %404  ;;  %v379_v61 = vpop.permute.xlu0 %378  ;;  %584 = vmatpush1.bf16.msra.mxu1 %v534_v58 }
  0xb2   : > { %v409_v63 = vsel %vm406_vm7, %v403_v36, %v405_v60  ;;  %v383_v0 = vsel %vm380_vm6, %v377_v34, %v379_v61  ;;  %1397 = vmatprep.subr.bf16.mxu1 %v1510_v5  ;;  %v1675_v33 = vmul.u32.u64.low 3817748708, %v259_v31  ;;  %v1676_v34 = vmul.u32.u64.high 3817748708, %v259_v31, %v1675_v33 }
  0xb3   : > { %415 = vst.msk [vmem:[#allocation3 + $0x58] sm:$0xff] %vm336_vm0, %v409_v63  ;;  %389 = vst.msk [vmem:[#allocation3 + $0x40] sm:$0xff] %vm336_vm0, %v383_v0  ;;  %v303_v36 = vadd.s32 18, %v279_v32 }
  0xb4   : > { %1333 = vmatmul.mubr.msk.bf16.vlgmr.msra.gmra.mxu1 %vm1883_vm10, %v506_v62  ;;  %v288_v42 = vshrl.u32 %v1676_v34, 4 }
  0xb5   : > { %v353_v3 = vpop.permute.xlu1 %352  ;;  %v326_v4 = vpop.permute.xlu0 %325  ;;  %1398 = vmatpush3.bf16.msra.mxu1 %v567_v1  ;;  %1407 = vmatprep.mubr.msk.bf16.mxu1 %vm1882_vm11, %v1510_v5 }
  0xb6   : > { %v357_v6 = vsel %vm1884_vm9, %v351_v48, %v353_v3  ;;  %v330_v7 = vsel %vm327_vm8, %v324_v46, %v326_v4  ;;  %1399 = vmatprep.subr.bf16.mxu1 %v1510_v5  ;;  %v289_v51 = vmul.u32 18, %v288_v42 }
  0xb7   : > { %363 = vst.msk [vmem:[#allocation3 + $0x28] sm:$0xff] %vm336_vm0, %v357_v6  ;;  %337 = vst.msk [vmem:[#allocation3 + $0x10] sm:$0xff] %vm336_vm0, %v330_v7 }
  0xb8   : > { %v290_v54 = vsub.s32 %v259_v31, %v289_v51 }
  0xb9   : > { %1400 = vmatpush3.bf16.msra.mxu1 %v545_v9  ;;  %v749_v3 = vpop.permute.xlu1 %748 }
  0xba   : > { %1401 = vmatprep.subr.bf16.mxu1 %v1510_v5  ;;  %v515_v13 = vld [vmem:[#allocation3 + $0x40] sm:$0xff]  ;;  %v518_v14 = vld [vmem:[#allocation3 + $0x58] sm:$0xff]  ;;  %v304_v55 = vadd.s32 18, %v290_v54 }
  0xbb   : > { %v539_v15 = vpack.c.bf16 %v518_v14, %v515_v13 }
  0xbd   : > { %1402 = vmatpush3.bf16.msra.mxu1 %v542_v12 }
  0xbe   : > { %1403 = vmatprep.subr.bf16.mxu1 %v1510_v5  ;;  %v509_v16 = vld [vmem:[#allocation3 + $0x10] sm:$0xff]  ;;  %v512_v17 = vld [vmem:[#allocation3 + $0x28] sm:$0xff] }
  0xbf   : > { %v536_v18 = vpack.c.bf16 %v512_v17, %v509_v16 }
  0xc1   : > { %1404 = vmatpush3.bf16.msra.mxu1 %v539_v15 }
  0xc2   : > { %1405 = vmatprep.subr.bf16.mxu1 %v1510_v5  ;;  %v553_v37 = vpop.permute.xlu0 %552 }
  0xc5   : > { %1406 = vmatpush3.bf16.msra.mxu1 %v536_v18 }
  0xc6   : > { %1411 = vmatprep.subr.bf16.mxu1 %v1510_v5  ;;  %v724_v4 = vpop.permute.xlu0 %723 }
  0xc8   : > { %1408 = vmatmul.mubr.msk.bf16.vlgmr.msra.gmra.mxu1 %vm1883_vm10, %v506_v62  ;;  %vm300_vm10 = vmand %vm297_vm12, %vm294_vm15 }
  0xc9   : > { %1421 = vmatprep.mubr.msk.bf16.mxu1 %vm1882_vm11, %v1510_v5  ;;  %vm299_vm11 = vmand %vm296_vm14, %vm293_vm13  ;;  %v306_v41 = vsel %vm300_vm10, %v303_v36, %v279_v32  ;;  %vm295_vm10 = vcmp.ne.s32.totalorder %v290_v54, 0 }
  0xca   : > { %v305_v38 = vsel %vm299_vm11, %v302_v35, %v268_v30  ;;  %vm1688_vm13 = vcmp.lt.s32.totalorder %v306_v41, 16  ;;  %vm298_vm11 = vcmp.lt.s32.totalorder %v290_v54, 0 }
  0xcb   : > { %vm1681_vm9 = vcmp.lt.s32.totalorder %v305_v38, 16  ;;  %vm301_vm14 = vmand %vm298_vm11, %vm295_vm10 }
  0xcc   : > { %v307_v56 = vsel %vm301_vm14, %v304_v55, %v290_v54 }
  0xcd   : > { %vm1709_vm15 = vcmp.lt.s32.totalorder %v307_v56, 16 }
 0x174   : > { %v603_v39 = vpop.f32.mrf.mxu1 }
 0x175   : > { %v1678_v40 = vadd.f32 %v603_v39, %v553_v37 }
 0x176   : > { %v605_v44 = vpop.f32.mrf.mxu1 }
 0x177   : > { %v650_v45 = vmax.f32 %v1678_v40, 0.0  ;;  %v1686_v46 = vadd.f32 %v605_v44, %v553_v37 }
 0x178   : > { %v607_v48 = vpop.f32.mrf.mxu1 }
 0x179   : > { %v659_v49 = vsel %vm1681_vm9, %v650_v45, 0.0  ;;  %v651_v50 = vmax.f32 %v1686_v46, 0.0 }
 0x17a   : > { %v608_v52 = vpop.f32.mrf.mxu1  ;;  %837 = vrot.lane.b32.xlu1 %v659_v49, %s1501_s27  ;;  %817 = vrot.lane.b32.xlu0 %v659_v49, %s1503_s29 }
 0x17b   : > { %v660_v53 = vsel %vm1688_vm13, %v651_v50, 0.0 }
 0x17e   : > { %797 = vrot.lane.b32.xlu1 %v659_v49, %s1502_s28  ;;  %725 = vrot.lane.b32.xlu0 %v659_v49, %s1505_s7 }
 0x182   : > { %777 = vrot.lane.b32.xlu1 %v659_v49, %s1504_s30  ;;  %750 = vrot.lane.b32.xlu0 %v659_v49, %s1506_s8 }
 0x186   : > { %839 = vrot.lane.b32.xlu1 %v660_v53, %s1501_s27  ;;  %675 = vrot.lane.b32.xlu0 %v659_v49, %s1507_s9 }
 0x188   : > { %v644_v57 = vpop.f32.mrf.mxu1 }
 0x189   : > { %v645_v58 = vadd.f32 %v644_v57, %v553_v37 }
 0x18a   : > { %v1409_v60 = vpop.f32.mrf.mxu1  ;;  %799 = vrot.lane.b32.xlu1 %v660_v53, %s1502_s28  ;;  %700 = vrot.lane.b32.xlu0 %v659_v49, %s1509_s10 }
 0x18b   : > { %v652_v61 = vmax.f32 %v645_v58, 0.0 }
 0x18c   : > { %v647_v62 = vpop.f32.mrf.mxu1 }
 0x18d   : > { %v661_v63 = vsel %vm1709_vm15, %v652_v61, 0.0 }
 0x18e   : > { %664 = vst.msk [vmem:[#allocation2 + $0x18] sm:$0xff] %vm336_vm0, %v661_v63  ;;  %v1410_v0 = vpop.f32.mrf.mxu1  ;;  %819 = vrot.lane.b32.xlu1 %v660_v53, %s1503_s29 }
 0x192   : > { %779 = vrot.lane.b32.xlu1 %v660_v53, %s1504_s30 }
 0x195   : > { %v767_v1 = vld [vmem:[#allocation2 + $0x18] sm:$0xff] }
 0x196   : > { %770 = vst.msk [vmem:[#allocation3 + $0x70] sm:$0xff] %vm336_vm0, %v767_v1  ;;  %841 = vrot.lane.b32.xlu0 %v767_v1, %s1501_s27  ;;  %727 = vrot.lane.b32.xlu1 %v660_v53, %s1505_s7 }
 0x19a   : > { %801 = vrot.lane.b32.xlu0 %v767_v1, %s1502_s28  ;;  %752 = vrot.lane.b32.xlu1 %v660_v53, %s1506_s8 }
 0x19e   : > { %821 = vrot.lane.b32.xlu0 %v767_v1, %s1503_s29  ;;  %677 = vrot.lane.b32.xlu1 %v660_v53, %s1507_s9 }
 0x1a2   : > { %781 = vrot.lane.b32.xlu0 %v767_v1, %s1504_s30  ;;  %702 = vrot.lane.b32.xlu1 %v660_v53, %s1509_s10 }
 0x1a6   : > { %673 = vrot.lane.b32.xlu0 %v1510_v5, %s1507_s9  ;;  %698 = vrot.lane.b32.xlu1 %v1510_v5, %s1509_s10 }
 0x1aa   : > { %729 = vrot.lane.b32.xlu0 %v767_v1, %s1505_s7  ;;  %754 = vrot.lane.b32.xlu1 %v767_v1, %s1506_s8 }
 0x1ae   : > { %679 = vrot.lane.b32.xlu0 %v767_v1, %s1507_s9  ;;  %704 = vrot.lane.b32.xlu1 %v767_v1, %s1509_s10  ;;  %v866_v1 = vld [vmem:[#allocation3 + $0x70] sm:$0xff] }
 0x1b2   : > { %897 = vperm.xlu0 %1458, %v894_v2  }
 0x1ec   : > { %v838_v6 = vpop.permute.xlu1 %837  ;;  %v818_v7 = vpop.permute.xlu0 %817 }
 0x1f0   : > { %v798_v8 = vpop.permute.xlu1 %797  ;;  %v726_v9 = vpop.permute.xlu0 %725 }
 0x1f1   : > { %v1741_v10 = vsel %vm380_vm6, %v724_v4, %v726_v9 }
 0x1f4   : > { %v778_v11 = vpop.permute.xlu1 %777  ;;  %v751_v12 = vpop.permute.xlu0 %750 }
 0x1f5   : > { %v1744_v13 = vsel %vm406_vm7, %v749_v3, %v751_v12 }
 0x1f6   : > { %v882_v46 = vpack.c.bf16 %v1744_v13, %v1741_v10 }
 0x1f8   : > { %v840_v14 = vpop.permute.xlu1 %839  ;;  %v676_v18 = vpop.permute.xlu0 %675 }
 0x1f9   : > { %v843_v15 = vsel %vm497_vm1, %v838_v6, %v840_v14 }
 0x1fa   : > { %v891_v26 = vpack.c.bf16 %v843_v15, %v843_v15 }
 0x1fc   : > { %v800_v16 = vpop.permute.xlu1 %799  ;;  %v701_v21 = vpop.permute.xlu0 %700  ;;  %v904_v32 = vsel %vm559_vm2, %v891_v26, 0 }
 0x1fd   : > { %v803_v17 = vsel %vm455_vm3, %v798_v8, %v800_v16 }
 0x200   : > { %v820_v19 = vpop.permute.xlu1 %819 }
 0x201   : > { %v823_v20 = vsel %vm476_vm4, %v818_v7, %v820_v19 }
 0x202   : > { %v888_v48 = vpack.c.bf16 %v823_v20, %v803_v17 }
 0x204   : > { %v780_v22 = vpop.permute.xlu1 %779 }
 0x205   : > { %v783_v23 = vsel %vm434_vm5, %v778_v11, %v780_v22 }
 0x206   : > { %v1491_v0 = vpack.c.bf16 %v783_v23, %v650_v45 }
 0x208   : > { %v842_v24 = vpop.permute.xlu0 %841  ;;  %v728_v25 = vpop.permute.xlu1 %727 }
 0x209   : > { %v844_v27 = vsel %vm497_vm1, %v840_v14, %v842_v24  ;;  %850 = vst.msk [vmem:[#allocation3 + $0xd0] sm:$0xff] %vm336_vm0, %v842_v24  ;;  %v732_v28 = vsel %vm380_vm6, %v726_v9, %v728_v25  ;;  %vm1891_vm1 = vcmask 146432  }
 0x20a   : > { %v892_v29 = vpack.c.bf16 %v844_v27, %v844_v27  ;;  %vm1892_vm12 = vmmov %vm1891_vm1 }
 0x20b   : > { %vm1893_vm11 = vmmov %vm1891_vm1 }
 0x20c   : > { %v802_v30 = vpop.permute.xlu0 %801  ;;  %v753_v31 = vpop.permute.xlu1 %752  ;;  %1335 = vmatprep.subr.msk.bf16.mxu0 %vm559_vm2, %v892_v29 }
 0x20d   : > { %v804_v33 = vsel %vm455_vm3, %v800_v16, %v802_v30  ;;  %810 = vst.msk [vmem:[#allocation3 + $0xa0] sm:$0xff] %vm336_vm0, %v802_v30  ;;  %v757_v34 = vsel %vm406_vm7, %v751_v12, %v753_v31  ;;  %919 = vmatpush1.bf16.msra.mxu0 %v904_v32  ;;  %vm1512_vm3 = vmmov 1   ;;  %v851_v12 = vld [vmem:[%s1878_s3] sm:$0xf] }
 0x20e   : > { %v883_v60 = vpack.c.bf16 %v757_v34, %v732_v28  ;;  %vm1490_vm10 = vmpackc.low %vm1512_vm3, %vm1681_vm9 }
 0x210   : > { %v822_v35 = vpop.permute.xlu0 %821  ;;  %v878_v36 = vld [vmem:[#allocation3 + $0xd0] sm:$0xff]  ;;  %v678_v37 = vpop.permute.xlu1 %677 }
 0x211   : > { %v824_v38 = vsel %vm476_vm4, %v820_v19, %v822_v35  ;;  %830 = vst.msk [vmem:[#allocation3 + $0xb8] sm:$0xff] %vm336_vm0, %v822_v35  ;;  %v893_v39 = vpack.c.bf16 %v878_v36, %v878_v36  ;;  %v682_v41 = vsel %vm327_vm8, %v676_v18, %v678_v37 }
 0x212   : > { %v889_v42 = vpack.c.bf16 %v824_v38, %v804_v33 }
 0x213   : > { %v910_v44 = vsel %vm559_vm2, %v893_v39, 0  ;;  %vm1487_vm2 = vmpackc.low %vm1512_vm3, %vm1688_vm13 }
 0x214   : > { %1412 = vmatpush3.bf16.msra.mxu1 %v910_v44  ;;  %v782_v49 = vpop.permute.xlu0 %781  ;;  %v703_v51 = vpop.permute.xlu1 %702  ;;  %920 = vmatprep.subr.bf16.mxu0 %v889_v42  ;;  %v872_v55 = vld [vmem:[#allocation3 + $0xa0] sm:$0xff]  ;;  %v1474_v42 = vld [vmem:[%s1880_s5 + $0x28] sm:$0xff]  }
 0x215   : > { %v784_v52 = vsel %vm434_vm5, %v780_v22, %v782_v49  ;;  %790 = vst.msk [vmem:[#allocation3 + $0x88] sm:$0xff] %vm336_vm0, %v782_v49  ;;  %1413 = vmatprep.subr.bf16.mxu1 %v1510_v5  ;;  %v707_v53 = vsel %vm1891_vm1, %v701_v21, %v703_v51  ;;  %921 = vmatpush1.bf16.msra.mxu0 %v888_v48  ;;  %v1475_v44 = vld [vmem:[%s1880_s5 + $0x60] sm:$0xff]   ;;  %v1477_v49 = vld [vmem:[%s1880_s5 + $0x58] sm:$0xff]  }
 0x216   : > { %v1488_v58 = vpack.c.bf16 %v784_v52, %v651_v50  ;;  %v880_v4 = vpack.c.bf16 %v707_v53, %v682_v41  ;;  %v1473_v41 = vld [vmem:[%s1880_s5 + $0x68] sm:$0xff]   ;;  %v1476_v48 = vld [vmem:[%s1880_s5 + $0x20] sm:$0xff]   ;;  %v1479_v52 = vld [vmem:[%s1880_s5 + $0x50] sm:$0xff]  }
 0x217   : > { %v1480_v53 = vld [vmem:[%s1880_s5 + $0x10] sm:$0xff]  }
 0x218   : > { %v674_v54 = vpop.permute.xlu0 %673  ;;  %v875_v56 = vld [vmem:[#allocation3 + $0xb8] sm:$0xff]  ;;  %v699_v57 = vpop.permute.xlu1 %698  ;;  %1489 = vmatprep.subr.msk.bf16.mxu0 %vm1487_vm2, %v1488_v58 }
 0x219   : > { %v681_v61 = vsel %vm327_vm8, %v674_v54, %v676_v18  ;;  %v890_v62 = vpack.c.bf16 %v875_v56, %v872_v55  ;;  %v706_v63 = vsel %vm1892_vm12, %v699_v57, %v701_v21  ;;  %1492 = vmatpush1.bf16.msk.msra.mxu0 %vm1490_vm10, %v1491_v0  ;;  %v1481_v54 = vld [vmem:[%s1880_s5 + $0x48] sm:$0xff]   ;;  %v1483_v56 = vld [vmem:[%s1880_s5 + $0x40] sm:$0xff]  }
 0x21a   : > { %924 = vmatprep.subr.bf16.mxu0 %v883_v60  ;;  %v879_v40 = vpack.c.bf16 %v706_v63, %v681_v61  ;;  %v1482_v55 = vld [vmem:[%s1880_s5 + $0x8] sm:$0xff]   ;;  %v1484_v57 = vld [vmem:[%s1880_s5] sm:$0xff]  }
 0x21b   : > { %1414 = vmatpush3.bf16.msra.mxu1 %v890_v62 }
 0x21c   : > { %v730_v50 = vpop.permute.xlu0 %729  ;;  %1415 = vmatprep.subr.bf16.mxu1 %v1510_v5  ;;  %v869_v2 = vld [vmem:[#allocation3 + $0x88] sm:$0xff]  ;;  %v755_v3 = vpop.permute.xlu1 %754 }
 0x21d   : > { %v733_v6 = vsel %vm380_vm6, %v728_v25, %v730_v50  ;;  %v887_v7 = vpack.c.bf16 %v869_v2, %v866_v1  ;;  %v758_v8 = vsel %vm406_vm7, %v753_v31, %v755_v3  ;;  %925 = vmatpush1.bf16.msra.mxu0 %v882_v46  ;;  %vm1894_vm6 = vcmask 588800  }
 0x21e   : > { %739 = vst.msk [vmem:[#allocation3 + $0x40] sm:$0xff] %vm336_vm0, %v733_v6  ;;  %764 = vst.msk [vmem:[#allocation3 + $0x58] sm:$0xff] %vm336_vm0, %v758_v8  ;;  %926 = vmatprep.subr.bf16.mxu0 %v880_v4 }
 0x21f   : > { %1416 = vmatpush3.bf16.msra.mxu1 %v887_v7  ;;  %vm1895_vm7 = vmmov %vm1894_vm6 }
 0x220   : > { %v680_v45 = vpop.permute.xlu0 %679  ;;  %v705_v9 = vpop.permute.xlu1 %704  ;;  %1417 = vmatprep.subr.bf16.mxu1 %v1510_v5 }
 0x221   : > { %v683_v10 = vsel %vm327_vm8, %v678_v37, %v680_v45  ;;  %v708_v11 = vsel %vm1893_vm11, %v703_v51, %v705_v9  ;;  %927 = vmatpush1.bf16.msra.mxu0 %v879_v40  ;;  %v1471_v37 = vld [vmem:[%s1880_s5 + $0x70] sm:$0xff]   ;;  %v1478_v51 = vld [vmem:[%s1880_s5 + $0x18] sm:$0xff]  }
 0x222   : > { %689 = vst.msk [vmem:[#allocation3 + $0x10] sm:$0xff] %vm336_vm0, %v683_v10  ;;  %714 = vst.msk [vmem:[#allocation3 + $0x28] sm:$0xff] %vm336_vm0, %v708_v11  ;;  %1372 = vmatprep.subr.bf16.mxu0 %v1469_v43 }
 0x224   : > { %1336 = vmatmul.mubr.msk.bf16.vlgmr.msra.gmra.mxu0 %vm1894_vm6, %v851_v12 }
 0x225   : > { %v860_v13 = vld [vmem:[#allocation3 + $0x40] sm:$0xff]  ;;  %v863_v14 = vld [vmem:[#allocation3 + $0x58] sm:$0xff]  ;;  %1373 = vmatpush3.bf16.msra.mxu0 %v1470_v47 }
 0x226   : > { %v884_v15 = vpack.c.bf16 %v863_v14, %v860_v13  ;;  %1374 = vmatprep.subr.bf16.mxu0 %v1471_v37  ;;  %v1486_v13 = vld [vmem:[%s1880_s5 + $0x80] sm:$0xff]  }
 0x228   : > { %1418 = vmatpush3.bf16.msra.mxu1 %v884_v15 }
 0x229   : > { %1419 = vmatprep.subr.bf16.mxu1 %v1510_v5  ;;  %v854_v16 = vld [vmem:[#allocation3 + $0x10] sm:$0xff]  ;;  %v857_v17 = vld [vmem:[#allocation3 + $0x28] sm:$0xff]  ;;  %1375 = vmatpush3.bf16.msra.mxu0 %v1472_v59 }
 0x22a   : > { %v881_v18 = vpack.c.bf16 %v857_v17, %v854_v16  ;;  %1376 = vmatprep.subr.bf16.mxu0 %v1473_v41 }
 0x22c   : > { %1420 = vmatpush3.bf16.msra.mxu1 %v881_v18 }
 0x22d   : > { %v898_v19 = vpop.permute.xlu0 %897  ;;  %1377 = vmatpush3.bf16.msra.mxu0 %v1474_v42 }
 0x22e   : > { %1378 = vmatprep.subr.bf16.mxu0 %v1475_v44 }
 0x22f   : > { %1422 = vmatmul.mubr.msk.bf16.vlgmr.msra.gmra.mxu1 %vm1895_vm7, %v851_v12  ;;  %v1485_v12 = vld [vmem:[%s1880_s5 + $0x88] sm:$0xff]  }
 0x231   : > { %1379 = vmatpush3.bf16.msra.mxu0 %v1476_v48 }
 0x232   : > { %1380 = vmatprep.subr.bf16.mxu0 %v1477_v49 }
 0x235   : > { %1381 = vmatpush3.bf16.msra.mxu0 %v1478_v51 }
 0x236   : > { %1382 = vmatprep.subr.bf16.mxu0 %v1479_v52 }
 0x239   : > { %1383 = vmatpush3.bf16.msra.mxu0 %v1480_v53 }
 0x23a   : > { %1384 = vmatprep.subr.bf16.mxu0 %v1481_v54 }
 0x23d   : > { %1385 = vmatpush3.bf16.msra.mxu0 %v1482_v55 }
 0x23e   : > { %1386 = vmatprep.subr.bf16.mxu0 %v1483_v56 }
 0x241   : > { %1387 = vmatpush3.bf16.msra.mxu0 %v1484_v57 }
 0x242   : > { %1425 = vmatprep.subr.bf16.mxu0 %v1510_v5 }
 0x2e4   : > { %v946_v20 = vpop.f32.mrf.mxu0 }
 0x2e5   : > { %v947_v21 = vadd.f32 %v946_v20, %v898_v19 }
 0x2e6   : > { %v948_v22 = vpop.f32.mrf.mxu0 }
 0x2e7   : > { %v993_v23 = vmax.f32 %v947_v21, 0.0  ;;  %v949_v24 = vadd.f32 %v948_v22, %v898_v19 }
 0x2e8   : > { %v950_v25 = vpop.f32.mrf.mxu0 }
 0x2e9   : > { %v996_v26 = vsel %vm1681_vm9, %v993_v23, 0.0  ;;  %v994_v27 = vmax.f32 %v949_v24, 0.0 }
 0x2ea   : > { %v951_v28 = vpop.f32.mrf.mxu0  ;;  %1008 = vrot.lane.b32.xlu0 %v996_v26, %s1504_s30 }
 0x2eb   : > { %v997_v29 = vsel %vm1688_vm13, %v994_v27, 0.0 }
 0x2ef   : > { %v987_v30 = vpop.f32.mrf.mxu1 }
 0x2f0   : > { %v988_v31 = vadd.f32 %v987_v30, %v898_v19 }
 0x2f1   : > { %v1423_v32 = vpop.f32.mrf.mxu1 }
 0x2f2   : > { %v995_v33 = vmax.f32 %v988_v31, 0.0 }
 0x2f3   : > { %v990_v34 = vpop.f32.mrf.mxu1 }
 0x2f4   : > { %v998_v35 = vsel %vm1709_vm15, %v995_v33, 0.0 }
 0x2f5   : > { %1001 = vst.msk [vmem:[#allocation2 + $0x18] sm:$0xff] %vm336_vm0, %v998_v35  ;;  %v1424_v36 = vpop.f32.mrf.mxu1 }
 0x2fc   : > { %v1004_v38 = vld [vmem:[#allocation2 + $0x18] sm:$0xff] }
 0x2fd   : > { %v1459_v39 = vpack.i.bf16 %v1004_v38, %v997_v29 }
 0x2ff   : > { %1460 = vrot.lane.b32.xlu1 %v1459_v39, %s1504_s30 }
 0x35c   : > { %v1009_v62 = vpop.permute.xlu0 %1008 }
 0x371   : > { %v1461_v58 = vpop.permute.xlu1 %1460 }
 0x372   : > { %v1463_v60 = vunpack.i.h.bf16 %v1461_v58  ;;  %v1462_v61 = vunpack.i.l.bf16 %v1461_v58 }
 0x374   : > { %v1021_v63 = vmax.f32 %v1004_v38, %v1463_v60  ;;  %v1015_v0 = vsel %vm434_vm5, %v1462_v61, %v1463_v60  ;;  %v1014_v46 = vsel %vm434_vm5, %v1009_v62, %v1462_v61  ;;  %vm1896_vm5 = vmmov 0  }
 0x375   : > { %v1019_v50 = vmax.f32 %v996_v26, %v1014_v46  ;;  %v1020_v1 = vmax.f32 %v997_v29, %v1015_v0 }
 0x377   : > { %1025 = vrot.lane.b32.xlu0 %v1019_v50, %s1503_s29  ;;  %v1464_v2 = vpack.i.bf16 %v1021_v63, %v1020_v1 }
 0x379   : > { %1465 = vrot.lane.b32.xlu1 %v1464_v2, %s1503_s29 }
 0x3e9   : > { %v1026_v7 = vpop.permute.xlu0 %1025 }
 0x3eb   : > { %v1466_v3 = vpop.permute.xlu1 %1465 }
 0x3ec   : > { %v1468_v4 = vunpack.i.h.bf16 %v1466_v3  ;;  %v1467_v6 = vunpack.i.l.bf16 %v1466_v3 }
 0x3ee   : > { %v1031_v8 = vsel %vm476_vm4, %v1026_v7, %v1467_v6  ;;  %v1032_v40 = vsel %vm476_vm4, %v1467_v6, %v1468_v4  ;;  %v1038_v14 = vmax.f32 %v1021_v63, %v1468_v4  ;;  %vm1269_vm4 = vcmask 523264  }
 0x3ef   : > { %v1036_v45 = vmax.f32 %v1019_v50, %v1031_v8  ;;  %v1037_v9 = vmax.f32 %v1020_v1, %v1032_v40 }
 0x3f0   : > { %v1041_v15 = vpack.c.bf16 %v1038_v14, %v1038_v14 }
 0x3f1   : > { %v1039_v10 = vpack.c.bf16 %v1036_v45, %v1036_v45  ;;  %v1040_v11 = vpack.c.bf16 %v1037_v9, %v1037_v9 }
 0x3f3   : > { %1221 = vmatprep.mubr.bf16.mxu0 %v1040_v11 }
 0x3f4   : > { %1222 = vmatmul.mubr.bf16.vlgmr.msra.gmra.mxu0 %v1039_v10 }
 0x3f5   : > { %1426 = vmatpush3.bf16.msra.mxu0 %v1485_v12  ;;  %1429 = vmatprep.mubr.msk.bf16.mxu0 %vm1896_vm5, %v1510_v5 }
 0x3f6   : > { %1427 = vmatprep.subr.bf16.mxu0 %v1510_v5 }
 0x3f9   : > { %1428 = vmatpush3.bf16.msra.mxu0 %v1486_v13 }
 0x3fc   : > { %1430 = vmatmul.mubr.msk.bf16.vlgmr.msra.gmra.mxu0 %vm336_vm0, %v1041_v15 }
 0x4b4   : > { %v1388_v16 = vpop.f32.mrf.mxu0 }
 0x4b6   : > { %v1389_v17 = vpop.f32.mrf.mxu0 }
 0x4b7   : > { %v1390_v20 = vadd.f32 %v1389_v17, %v1388_v16 }
 0x4b8   : > { %v1391_v18 = vpop.f32.mrf.mxu0 }
 0x4ba   : > { %v1392_v19 = vpop.f32.mrf.mxu0 }
 0x4bc   : > { %v1263_v21 = vpop.f32.mrf.mxu0 }
 0x4bd   : > { %v1264_v22 = vadd.f32 %v1390_v20, %v1263_v21 }
 0x4be   : > { %v1431_v23 = vpop.f32.mrf.mxu0 }
 0x4bf   : > { %1270 = vst.msk [vmem:[%s249_s16] sm:$0xff] %vm1269_vm4, %v1264_v22 }
 0x4c0   : > { %v1266_v5 = vpop.f32.mrf.mxu0 }
 0x4c2   : > { %v1432_v24 = vpop.f32.mrf.mxu0 }
 0x4c3 PF: > { %s16_s21 = sadd.s32 1, %s1499_s21  }
 0x4c4   : > { %p13_p4 = scmp.ge.s32.totalorder %s16_s21, 4  }
 0x4c6   :  { %15 = sbr.rel (!%p13_p4) target bundleno = 1 (0x1), region = 74 }

</bundles_post_ra>
